<compile_context>
chip_gen: v5e
topology: v5e:2x2
jax: 0.10.0
libtpu: 0.0.40
codegen_flags: <defaults>
</compile_context>

<pallas_src>
import functools

import jax
import jax.numpy as jnp
from jax.experimental import pallas as pl
from jax.experimental.pallas import tpu as pltpu

EPSILON = 1e-6


def _round_up(x, m):
    return (x + m - 1) // m * m


def _combined_kernel(*refs, wmap_weight, has_wmap, needs_mask, n_valid,
                     tile_n, tiles_per_split):
    if has_wmap:
        (x_ref, tgt_ref, wmap_ref, cw_ref,
         ce_ref, inter_ref, sinp_ref, soh_ref,
         acc_ce, acc_int, acc_inp, acc_oh) = refs
    else:
        (x_ref, tgt_ref, cw_ref,
         ce_ref, inter_ref, sinp_ref, soh_ref,
         acc_ce, acc_int, acc_inp, acc_oh) = refs
        wmap_ref = None

    s = pl.program_id(1)
    t = pl.program_id(2)
    nt = pl.num_programs(2)

    @pl.when(t == 0)
    def _():
        acc_ce[...] = jnp.zeros_like(acc_ce)
        acc_int[...] = jnp.zeros_like(acc_int)
        acc_inp[...] = jnp.zeros_like(acc_inp)
        acc_oh[...] = jnp.zeros_like(acc_oh)

    x = x_ref[0].astype(jnp.float32)     # (C, TN) logits (bf16 input welcome)
    tgt = tgt_ref[0]                     # (1, TN) int32 class ids
    cw = cw_ref[...]                     # (C, 1)  CE class weights

    C, TN = x.shape

    # One-hot mask reconstructed in-kernel; reused for CE gather and dice.
    class_ids = jax.lax.broadcasted_iota(jnp.int32, (C, TN), 0)
    oh_mask = class_ids == tgt           # (C, TN) bool

    if needs_mask:
        # Ragged tail / duplicate overhang tiles: global pixel index >= N is
        # invalid.  Selects (jnp.where) keep garbage/NaN out of the sums.
        lane = jax.lax.broadcasted_iota(jnp.int32, (1, TN), 1)
        off = (s * tiles_per_split + t) * tile_n
        valid = (off + lane) < n_valid   # (1, TN) bool
        oh_mask = jnp.logical_and(oh_mask, valid)

    # ---------------- pixel-weighted cross entropy ----------------
    m = jnp.max(x, axis=0, keepdims=True)                      # (1, TN)
    z = x - m
    lse = jnp.log(jnp.sum(jnp.exp(z), axis=0, keepdims=True))  # (1, TN)
    logp = z - lse                                             # (C, TN)

    # Fused one-hot gather: -cw[target] * log p[target] per pixel.
    picked = jnp.where(oh_mask, logp * cw, 0.0)                # (C, TN)
    loss = -jnp.sum(picked, axis=0, keepdims=True)             # (1, TN)

    if has_wmap:
        wmap = wmap_ref[0].astype(jnp.float32)                 # (1, TN)
        base = wmap + 1.0
        ww = float(wmap_weight)
        if ww == int(ww) and 1 <= int(ww) <= 8:
            # integer exponent (default 2.0): VPU multiplies, no EUP pow
            mod = base
            for _ in range(int(ww) - 1):
                mod = mod * base
        else:
            mod = base ** jnp.float32(ww)
        loss_mod = loss * mod
    else:
        loss_mod = loss

    if needs_mask:
        loss_mod = jnp.where(valid, loss_mod, 0.0)
        x_sum_src = jnp.where(valid, x, 0.0)
    else:
        x_sum_src = x

    # ------------- dice partial sums (raw inputs, as in PyTorch) -------------
    inter_src = jnp.where(oh_mask, x, 0.0)                     # (C, TN)
    oh_f = oh_mask.astype(jnp.float32)                         # (C, TN)

    # Lane-reduce each tile (XLU) into tiny accumulators.
    acc_ce[...] += jnp.sum(loss_mod, axis=1, keepdims=True)    # (1, 1)
    acc_int[...] += jnp.sum(inter_src, axis=1, keepdims=True)  # (C, 1)
    acc_inp[...] += jnp.sum(x_sum_src, axis=1, keepdims=True)  # (C, 1)
    acc_oh[...] += jnp.sum(oh_f, axis=1, keepdims=True)        # (C, 1)

    @pl.when(t == nt - 1)
    def _():
        ce_ref[0, 0] = acc_ce[...]
        inter_ref[0, 0] = acc_int[...]
        sinp_ref[0, 0] = acc_inp[...]
        soh_ref[0, 0] = acc_oh[...]


def multiclass_combined(logits, target, target_one_hot=None, weight_map=None,
                        class_weights=None, wmap_weight=2.0, weight_score=None,
                        *, tile_n=None):
    """Forward pass of MultiClassCombined.

    logits:         (B, C, H, W) float (bf16 or f32; streamed natively, upcast
                    to f32 in-kernel — prefer bf16 from the caller to halve
                    HBM traffic)
    target:         (B, H, W)    int class-index mask
    target_one_hot: ignored (assumed == one_hot(target); rebuilt in-kernel)
    weight_map:     (B, H, W)    float or None
    class_weights:  (C,)         float (CE class weights) or None
    wmap_weight:    python float (static)
    weight_score:   (C,) float or None (dice per-class weights)
    Returns a scalar float32 combined loss.
    """
    del target_one_hot  # reconstructed in-kernel from `target`

    B, C, H, W = logits.shape
    N = H * W

    x = logits.reshape(B, C, N)                       # keep native dtype
    tgt = target.reshape(B, 1, N).astype(jnp.int32)

    ww = float(wmap_weight) if wmap_weight is not None else 0.0
    has_wmap = (weight_map is not None) and (ww != 0.0)

    if class_weights is None:
        cw = jnp.ones((C, 1), jnp.float32)
    else:
        cw = jnp.asarray(class_weights, jnp.float32).reshape(C, 1)

    # ---- lane tile: ~2 MiB per (C, TN) f32 temp, up to 32K lanes ----
    if tile_n is None:
        tn_cap = ((1 << 21) // (C * 4)) // 128 * 128
        tn_cap = max(256, min(32768, tn_cap))
    else:
        tn_cap = max(128, int(tile_n) // 128 * 128)
    if N <= tn_cap:
        TN = _round_up(N, 128)
    else:
        TN = tn_cap

    num_t_total = -(-N // TN)

    # v7x: split the pixel axis into a second "parallel" axis when B alone
    # cannot occupy both TensorCores.
    splits = 2 if (num_t_total >= 2 and B % 2 == 1) else 1
    tiles_per_split = -(-num_t_total // splits)
    overhang = splits * tiles_per_split > num_t_total
    needs_mask = (num_t_total * TN != N) or overhang
    last_blk = num_t_total - 1

    def _pix_idx(s, t):
        g = s * tiles_per_split + t
        if overhang:
            g = jnp.minimum(g, last_blk)   # overhang tiles re-read the last
        return g                           # block; kernel masks them to zero

    in_specs = [
        pl.BlockSpec((1, C, TN), lambda b, s, t: (b, 0, _pix_idx(s, t))),   # logits
        pl.BlockSpec((1, 1, TN), lambda b, s, t: (b, 0, _pix_idx(s, t))),   # target
    ]
    inputs = [x, tgt]
    if has_wmap:
        wm = weight_map.reshape(B, 1, N)
        inputs.append(wm)
        in_specs.append(
            pl.BlockSpec((1, 1, TN), lambda b, s, t: (b, 0, _pix_idx(s, t))))
    inputs.append(cw)
    in_specs.append(pl.BlockSpec((C, 1), lambda b, s, t: (0, 0)))

    out_shapes = (
        jax.ShapeDtypeStruct((B, splits, 1, 1), jnp.float32),   # sum(CE * mod)
        jax.ShapeDtypeStruct((B, splits, C, 1), jnp.float32),   # intersection
        jax.ShapeDtypeStruct((B, splits, C, 1), jnp.float32),   # sum(inp)
        jax.ShapeDtypeStruct((B, splits, C, 1), jnp.float32),   # sum(one_hot)
    )
    out_specs = (
        pl.BlockSpec((1, 1, 1, 1), lambda b, s, t: (b, s, 0, 0)),
        pl.BlockSpec((1, 1, C, 1), lambda b, s, t: (b, s, 0, 0)),
        pl.BlockSpec((1, 1, C, 1), lambda b, s, t: (b, s, 0, 0)),
        pl.BlockSpec((1, 1, C, 1), lambda b, s, t: (b, s, 0, 0)),
    )
    scratch_shapes = [
        pltpu.VMEM((1, 1), jnp.float32),    # CE accumulator
        pltpu.VMEM((C, 1), jnp.float32),    # intersection accumulator
        pltpu.VMEM((C, 1), jnp.float32),    # sum(inp) accumulator
        pltpu.VMEM((C, 1), jnp.float32),    # sum(one_hot) accumulator
    ]

    kernel = functools.partial(
        _combined_kernel, wmap_weight=ww, has_wmap=has_wmap,
        needs_mask=needs_mask, n_valid=N, tile_n=TN,
        tiles_per_split=tiles_per_split)

    ce_part, inter, s_inp, s_oh = pl.pallas_call(
        kernel,
        out_shape=out_shapes,
        grid_spec=pltpu.PrefetchScalarGridSpec(
            num_scalar_prefetch=0,
            grid=(B, splits, tiles_per_split),
            in_specs=in_specs,
            out_specs=out_specs,
            scratch_shapes=scratch_shapes),
        compiler_params=pltpu.CompilerParams(
            dimension_semantics=("parallel", "parallel", "arbitrary"),
            vmem_limit_bytes=32 * 1024 * 1024),
    )(*inputs)

    # ---- tiny JAX epilogue: finish means, dice ratio, and the combination ----
    ce_mean = jnp.sum(ce_part) / jnp.float32(B * N)

    inter = jnp.sum(inter[..., 0], axis=1)    # (B, C)
    s_inp = jnp.sum(s_inp[..., 0], axis=1)
    s_oh = jnp.sum(s_oh[..., 0], axis=1)
    union = s_inp + s_oh + jnp.float32(EPSILON)
    per = 2.0 * inter / union
    if weight_score is not None:
        per = per * jnp.asarray(weight_score, jnp.float32)[None, :]
    dice_loss = jnp.mean(-1.0 * jnp.mean(per, axis=1))

    combined = ce_mean / (-1.0 * dice_loss)
    return combined


def _reference(logits, target, target_one_hot, weight_map, class_weights,
               wmap_weight, weight_score):
    """Pure-JAX reference matching the PyTorch MultiClassCombined forward."""
    B, C, H, W = logits.shape
    x = logits.reshape(B, C, -1).astype(jnp.float32)
    tgt = target.reshape(B, -1).astype(jnp.int32)
    wm = (weight_map.reshape(B, -1).astype(jnp.float32)
          if weight_map is not None else jnp.zeros((B, x.shape[-1]), jnp.float32))
    cw = (jnp.asarray(class_weights, jnp.float32)
          if class_weights is not None else jnp.ones((C,), jnp.float32))

    logp = jax.nn.log_softmax(x, axis=1)
    logp_t = jnp.take_along_axis(logp, tgt[:, None, :], axis=1)[:, 0, :]
    ce = jnp.mean(-cw[tgt] * logp_t * (wm + 1.0) ** float(wmap_weight))

    oh = target_one_hot.reshape(B, C, -1).astype(jnp.float32)
    inter = jnp.sum(x * oh, axis=2)
    union = jnp.sum(x, axis=2) + jnp.sum(oh, axis=2) + EPSILON
    per = 2.0 * inter / union
    if weight_score is not None:
        per = per * jnp.asarray(weight_score, jnp.float32)[None, :]
    dice = jnp.mean(-1.0 * jnp.mean(per, axis=1))

    return ce / (-1.0 * dice)


if __name__ == "__main__":
    # ---- case 1: B=2, evenly tiled, weight map + class/score weights ----
    key = jax.random.PRNGKey(0)
    k1, k2, k3 = jax.random.split(key, 3)

    B, C, H, W = 2, 4, 16, 16
    wmap_weight = 2.0
    class_weights = jnp.array([1.0, 2.0, 0.5, 1.5], jnp.float32)
    weight_score = jnp.array([1.0, 0.5, 2.0, 1.0], jnp.float32)

    # Softmax-normalized inputs (like network probabilities) so the dice
    # denominator in the combination is well-conditioned for the check.
    inp = jax.nn.softmax(jax.random.normal(k1, (B, C, H, W), jnp.float32), axis=1)
    target = jax.random.randint(k2, (B, H, W), 0, C, jnp.int32)
    target_one_hot = jax.nn.one_hot(target, C, axis=1, dtype=jnp.float32)
    weight_map = jax.random.uniform(k3, (B, H, W), jnp.float32)

    loss = multiclass_combined(inp, target, target_one_hot, weight_map,
                               class_weights, wmap_weight, weight_score)
    loss = jax.block_until_ready(loss)
    ref = _reference(inp, target, target_one_hot, weight_map, class_weights,
                     wmap_weight, weight_score)
    assert jnp.allclose(loss, ref, rtol=1e-4, atol=1e-6), (loss, ref)

    # ---- case 2: B=1, ragged pixel tail + pixel-split grid, no weight map ----
    k4, k5 = jax.random.split(jax.random.PRNGKey(1), 2)
    B2, C2, H2, W2 = 1, 4, 26, 26   # N=676: ragged tiles + overhang split
    inp2 = jax.nn.softmax(jax.random.normal(k4, (B2, C2, H2, W2), jnp.float32), axis=1)
    target2 = jax.random.randint(k5, (B2, H2, W2), 0, C2, jnp.int32)
    target_one_hot2 = jax.nn.one_hot(target2, C2, axis=1, dtype=jnp.float32)

    loss2 = multiclass_combined(inp2, target2, target_one_hot2, None,
                                class_weights, wmap_weight, None, tile_n=256)
    loss2 = jax.block_until_ready(loss2)
    ref2 = _reference(inp2, target2, target_one_hot2, None, class_weights,
                      wmap_weight, None)
    assert jnp.allclose(loss2, ref2, rtol=1e-4, atol=1e-6), (loss2, ref2)

    print("KERNEL_OK")
</pallas_src>

<mosaic_0001>
module attributes {stable_mosaic.version = 11 : i64} {
  func.func @_combined_kernel(%arg0: i32, %arg1: i32, %arg2: i32, %arg3: memref<1x4x256xf32, #tpu.memory_space<vmem>>, %arg4: memref<1x1x256xi32, #tpu.memory_space<vmem>>, %arg5: memref<1x1x256xf32, #tpu.memory_space<vmem>>, %arg6: memref<4x1xf32, #tpu.memory_space<vmem>>, %arg7: memref<1x1x1x1xf32, #tpu.memory_space<vmem>>, %arg8: memref<1x1x4x1xf32, #tpu.memory_space<vmem>>, %arg9: memref<1x1x4x1xf32, #tpu.memory_space<vmem>>, %arg10: memref<1x1x4x1xf32, #tpu.memory_space<vmem>>, %arg11: memref<1x1xf32, #tpu.memory_space<vmem>>, %arg12: memref<4x1xf32, #tpu.memory_space<vmem>>, %arg13: memref<4x1xf32, #tpu.memory_space<vmem>>, %arg14: memref<4x1xf32, #tpu.memory_space<vmem>>) attributes {dimension_semantics = [#tpu.dimension_semantics<parallel>, #tpu.dimension_semantics<parallel>, #tpu.dimension_semantics<arbitrary>], iteration_bounds = array<i64: 2, 1, 1>, scalar_prefetch = 0 : i64, scratch_operands = 4 : i64, tpu.core_type = #tpu.core_type<tc>, window_params = [{transform_indices = @transform_0, window_bounds = array<i64: 1, 4, 256>}, {transform_indices = @transform_1, window_bounds = array<i64: 1, 1, 256>}, {transform_indices = @transform_2, window_bounds = array<i64: 1, 1, 256>}, {pipeline_mode = #tpu.pipeline_mode<synchronous>, transform_indices = @transform_3, window_bounds = array<i64: 4, 1>}, {transform_indices = @transform_4, window_bounds = array<i64: 1, 1, 1, 1>}, {transform_indices = @transform_5, window_bounds = array<i64: 1, 1, 4, 1>}, {transform_indices = @transform_6, window_bounds = array<i64: 1, 1, 4, 1>}, {transform_indices = @transform_7, window_bounds = array<i64: 1, 1, 4, 1>}]} {
    %c0_i32 = arith.constant 0 : i32
    %0 = arith.cmpi eq, %arg2, %c0_i32 : i32
    %1 = arith.extui %0 : i1 to i32
    %c0_i32_0 = arith.constant 0 : i32
    %2 = arith.cmpi ne, %1, %c0_i32_0 : i32
    scf.if %2 {
      %cst_39 = arith.constant 0.000000e+00 : f32
      %62 = vector.broadcast %cst_39 : f32 to vector<1x1xf32>
      %c0_40 = arith.constant 0 : index
      %c0_41 = arith.constant 0 : index
      %63 = vector.load %arg11[%c0_40, %c0_41] : memref<1x1xf32, #tpu.memory_space<vmem>>, vector<1x1xf32>
      tpu.vector_store %arg11[%c0_40, %c0_41], %62 {strides = array<i32>} : memref<1x1xf32, #tpu.memory_space<vmem>>, vector<1x1xf32>,
      %cst_42 = arith.constant 0.000000e+00 : f32
      %64 = vector.broadcast %cst_42 : f32 to vector<4x1xf32>
      %c0_43 = arith.constant 0 : index
      %c0_44 = arith.constant 0 : index
      %65 = vector.load %arg12[%c0_43, %c0_44] : memref<4x1xf32, #tpu.memory_space<vmem>>, vector<4x1xf32>
      tpu.vector_store %arg12[%c0_43, %c0_44], %64 {strides = array<i32>} : memref<4x1xf32, #tpu.memory_space<vmem>>, vector<4x1xf32>,
      %cst_45 = arith.constant 0.000000e+00 : f32
      %66 = vector.broadcast %cst_45 : f32 to vector<4x1xf32>
      %c0_46 = arith.constant 0 : index
      %c0_47 = arith.constant 0 : index
      %67 = vector.load %arg13[%c0_46, %c0_47] : memref<4x1xf32, #tpu.memory_space<vmem>>, vector<4x1xf32>
      tpu.vector_store %arg13[%c0_46, %c0_47], %66 {strides = array<i32>} : memref<4x1xf32, #tpu.memory_space<vmem>>, vector<4x1xf32>,
      %cst_48 = arith.constant 0.000000e+00 : f32
      %68 = vector.broadcast %cst_48 : f32 to vector<4x1xf32>
      %c0_49 = arith.constant 0 : index
      %c0_50 = arith.constant 0 : index
      %69 = vector.load %arg14[%c0_49, %c0_50] : memref<4x1xf32, #tpu.memory_space<vmem>>, vector<4x1xf32>
      tpu.vector_store %arg14[%c0_49, %c0_50], %68 {strides = array<i32>} : memref<4x1xf32, #tpu.memory_space<vmem>>, vector<4x1xf32>,
    } else {
    }
    %c0 = arith.constant 0 : index
    %c0_1 = arith.constant 0 : index
    %c0_2 = arith.constant 0 : index
    %3 = vector.load %arg3[%c0, %c0_1, %c0_2] : memref<1x4x256xf32, #tpu.memory_space<vmem>>, vector<1x4x256xf32>
    %4 = vector.shape_cast %3 : vector<1x4x256xf32> to vector<4x256xf32>
    %c0_3 = arith.constant 0 : index
    %c0_4 = arith.constant 0 : index
    %c0_5 = arith.constant 0 : index
    %5 = vector.load %arg4[%c0_3, %c0_4, %c0_5] : memref<1x1x256xi32, #tpu.memory_space<vmem>>, vector<1x1x256xi32>
    %6 = vector.shape_cast %5 : vector<1x1x256xi32> to vector<1x256xi32>
    %c0_6 = arith.constant 0 : index
    %c0_7 = arith.constant 0 : index
    %7 = vector.load %arg6[%c0_6, %c0_7] : memref<4x1xf32, #tpu.memory_space<vmem>>, vector<4x1xf32>
    %8 = tpu.iota {dimensions = array<i32: 0>} : vector<4x256xi32>
    %9 = vector.broadcast %6 : vector<1x256xi32> to vector<4x256xi32>
    %10 = arith.cmpi eq, %8, %9 : vector<4x256xi32>
    %cst = arith.constant dense<0xFF800000> : vector<256xf32>
    %11 = vector.multi_reduction <maximumf>, %4, %cst [0] : vector<4x256xf32> to vector<256xf32>
    %12 = vector.shape_cast %11 : vector<256xf32> to vector<1x256xf32>
    %13 = vector.broadcast %12 : vector<1x256xf32> to vector<4x256xf32>
    %14 = arith.subf %4, %13 : vector<4x256xf32>
    %15 = math.exp %14 : vector<4x256xf32>
    %cst_8 = arith.constant dense<0.000000e+00> : vector<256xf32>
    %16 = vector.multi_reduction <add>, %15, %cst_8 [0] : vector<4x256xf32> to vector<256xf32>
    %17 = vector.shape_cast %16 : vector<256xf32> to vector<1x256xf32>
    %18 = math.log %17 : vector<1x256xf32>
    %19 = vector.broadcast %18 : vector<1x256xf32> to vector<4x256xf32>
    %20 = arith.subf %14, %19 : vector<4x256xf32>
    %21 = vector.broadcast %7 : vector<4x1xf32> to vector<4x256xf32>
    %22 = arith.mulf %20, %21 : vector<4x256xf32>
    %cst_9 = arith.constant 0.000000e+00 : f32
    %23 = vector.broadcast %cst_9 : f32 to vector<4x256xf32>
    %24 = arith.select %10, %22, %23 : vector<4x256xi1>, vector<4x256xf32>
    %cst_10 = arith.constant dense<0.000000e+00> : vector<256xf32>
    %25 = vector.multi_reduction <add>, %24, %cst_10 [0] : vector<4x256xf32> to vector<256xf32>
    %26 = vector.shape_cast %25 : vector<256xf32> to vector<1x256xf32>
    %cst_11 = arith.constant 0.000000e+00 : f32
    %27 = vector.broadcast %cst_11 : f32 to vector<1x256xf32>
    %28 = arith.subf %27, %26 : vector<1x256xf32>
    %c0_12 = arith.constant 0 : index
    %c0_13 = arith.constant 0 : index
    %c0_14 = arith.constant 0 : index
    %29 = vector.load %arg5[%c0_12, %c0_13, %c0_14] : memref<1x1x256xf32, #tpu.memory_space<vmem>>, vector<1x1x256xf32>
    %30 = vector.shape_cast %29 : vector<1x1x256xf32> to vector<1x256xf32>
    %cst_15 = arith.constant 1.000000e+00 : f32
    %31 = vector.broadcast %cst_15 : f32 to vector<1x256xf32>
    %32 = arith.addf %30, %31 : vector<1x256xf32>
    %33 = arith.mulf %32, %32 : vector<1x256xf32>
    %34 = arith.mulf %28, %33 : vector<1x256xf32>
    %cst_16 = arith.constant 0.000000e+00 : f32
    %35 = vector.broadcast %cst_16 : f32 to vector<4x256xf32>
    %36 = arith.select %10, %4, %35 : vector<4x256xi1>, vector<4x256xf32>
    %37 = arith.extui %10 : vector<4x256xi1> to vector<4x256xi32>
    %38 = arith.sitofp %37 : vector<4x256xi32> to vector<4x256xf32>
    %c0_17 = arith.constant 0 : index
    %c0_18 = arith.constant 0 : index
    %39 = vector.load %arg11[%c0_17, %c0_18] : memref<1x1xf32, #tpu.memory_space<vmem>>, vector<1x1xf32>
    %cst_19 = arith.constant dense<0.000000e+00> : vector<1xf32>
    %40 = vector.multi_reduction <add>, %34, %cst_19 [1] : vector<1x256xf32> to vector<1xf32>
    %41 = vector.shape_cast %40 : vector<1xf32> to vector<1x1xf32>
    %42 = arith.addf %39, %41 : vector<1x1xf32>
    %c0_20 = arith.constant 0 : index
    %c0_21 = arith.constant 0 : index
    %43 = vector.load %arg11[%c0_20, %c0_21] : memref<1x1xf32, #tpu.memory_space<vmem>>, vector<1x1xf32>
    tpu.vector_store %arg11[%c0_20, %c0_21], %42 {strides = array<i32>} : memref<1x1xf32, #tpu.memory_space<vmem>>, vector<1x1xf32>,
    %c0_22 = arith.constant 0 : index
    %c0_23 = arith.constant 0 : index
    %44 = vector.load %arg12[%c0_22, %c0_23] : memref<4x1xf32, #tpu.memory_space<vmem>>, vector<4x1xf32>
    %cst_24 = arith.constant dense<0.000000e+00> : vector<4xf32>
    %45 = vector.multi_reduction <add>, %36, %cst_24 [1] : vector<4x256xf32> to vector<4xf32>
    %46 = vector.shape_cast %45 : vector<4xf32> to vector<4x1xf32>
    %47 = arith.addf %44, %46 : vector<4x1xf32>
    %c0_25 = arith.constant 0 : index
    %c0_26 = arith.constant 0 : index
    %48 = vector.load %arg12[%c0_25, %c0_26] : memref<4x1xf32, #tpu.memory_space<vmem>>, vector<4x1xf32>
    tpu.vector_store %arg12[%c0_25, %c0_26], %47 {strides = array<i32>} : memref<4x1xf32, #tpu.memory_space<vmem>>, vector<4x1xf32>,
    %c0_27 = arith.constant 0 : index
    %c0_28 = arith.constant 0 : index
    %49 = vector.load %arg13[%c0_27, %c0_28] : memref<4x1xf32, #tpu.memory_space<vmem>>, vector<4x1xf32>
    %cst_29 = arith.constant dense<0.000000e+00> : vector<4xf32>
    %50 = vector.multi_reduction <add>, %4, %cst_29 [1] : vector<4x256xf32> to vector<4xf32>
    %51 = vector.shape_cast %50 : vector<4xf32> to vector<4x1xf32>
    %52 = arith.addf %49, %51 : vector<4x1xf32>
    %c0_30 = arith.constant 0 : index
    %c0_31 = arith.constant 0 : index
    %53 = vector.load %arg13[%c0_30, %c0_31] : memref<4x1xf32, #tpu.memory_space<vmem>>, vector<4x1xf32>
    tpu.vector_store %arg13[%c0_30, %c0_31], %52 {strides = array<i32>} : memref<4x1xf32, #tpu.memory_space<vmem>>, vector<4x1xf32>,
    %c0_32 = arith.constant 0 : index
    %c0_33 = arith.constant 0 : index
    %54 = vector.load %arg14[%c0_32, %c0_33] : memref<4x1xf32, #tpu.memory_space<vmem>>, vector<4x1xf32>
    %cst_34 = arith.constant dense<0.000000e+00> : vector<4xf32>
    %55 = vector.multi_reduction <add>, %38, %cst_34 [1] : vector<4x256xf32> to vector<4xf32>
    %56 = vector.shape_cast %55 : vector<4xf32> to vector<4x1xf32>
    %57 = arith.addf %54, %56 : vector<4x1xf32>
    %c0_35 = arith.constant 0 : index
    %c0_36 = arith.constant 0 : index
    %58 = vector.load %arg14[%c0_35, %c0_36] : memref<4x1xf32, #tpu.memory_space<vmem>>, vector<4x1xf32>
    tpu.vector_store %arg14[%c0_35, %c0_36], %57 {strides = array<i32>} : memref<4x1xf32, #tpu.memory_space<vmem>>, vector<4x1xf32>,
    %c0_i32_37 = arith.constant 0 : i32
    %59 = arith.cmpi eq, %arg2, %c0_i32_37 : i32
    %60 = arith.extui %59 : i1 to i32
    %c0_i32_38 = arith.constant 0 : i32
    %61 = arith.cmpi ne, %60, %c0_i32_38 : i32
    scf.if %61 {
      %c0_39 = arith.constant 0 : index
      %c0_40 = arith.constant 0 : index
      %62 = vector.load %arg11[%c0_39, %c0_40] : memref<1x1xf32, #tpu.memory_space<vmem>>, vector<1x1xf32>
      %c0_41 = arith.constant 0 : index
      %c0_42 = arith.constant 0 : index
      %c0_43 = arith.constant 0 : index
      %c0_44 = arith.constant 0 : index
      %63 = vector.load %arg7[%c0_41, %c0_42, %c0_43, %c0_44] : memref<1x1x1x1xf32, #tpu.memory_space<vmem>>, vector<1x1x1x1xf32>
      %64 = vector.shape_cast %63 : vector<1x1x1x1xf32> to vector<1x1xf32>
      %65 = vector.shape_cast %62 : vector<1x1xf32> to vector<1x1x1x1xf32>
      tpu.vector_store %arg7[%c0_41, %c0_42, %c0_43, %c0_44], %65 {strides = array<i32>} : memref<1x1x1x1xf32, #tpu.memory_space<vmem>>, vector<1x1x1x1xf32>,
      %c0_45 = arith.constant 0 : index
      %c0_46 = arith.constant 0 : index
      %66 = vector.load %arg12[%c0_45, %c0_46] : memref<4x1xf32, #tpu.memory_space<vmem>>, vector<4x1xf32>
      %c0_47 = arith.constant 0 : index
      %c0_48 = arith.constant 0 : index
      %c0_49 = arith.constant 0 : index
      %c0_50 = arith.constant 0 : index
      %67 = vector.load %arg8[%c0_47, %c0_48, %c0_49, %c0_50] : memref<1x1x4x1xf32, #tpu.memory_space<vmem>>, vector<1x1x4x1xf32>
      %68 = vector.shape_cast %67 : vector<1x1x4x1xf32> to vector<4x1xf32>
      %69 = vector.shape_cast %66 : vector<4x1xf32> to vector<1x1x4x1xf32>
      tpu.vector_store %arg8[%c0_47, %c0_48, %c0_49, %c0_50], %69 {strides = array<i32>} : memref<1x1x4x1xf32, #tpu.memory_space<vmem>>, vector<1x1x4x1xf32>,
      %c0_51 = arith.constant 0 : index
      %c0_52 = arith.constant 0 : index
      %70 = vector.load %arg13[%c0_51, %c0_52] : memref<4x1xf32, #tpu.memory_space<vmem>>, vector<4x1xf32>
      %c0_53 = arith.constant 0 : index
      %c0_54 = arith.constant 0 : index
      %c0_55 = arith.constant 0 : index
      %c0_56 = arith.constant 0 : index
      %71 = vector.load %arg9[%c0_53, %c0_54, %c0_55, %c0_56] : memref<1x1x4x1xf32, #tpu.memory_space<vmem>>, vector<1x1x4x1xf32>
      %72 = vector.shape_cast %71 : vector<1x1x4x1xf32> to vector<4x1xf32>
      %73 = vector.shape_cast %70 : vector<4x1xf32> to vector<1x1x4x1xf32>
      tpu.vector_store %arg9[%c0_53, %c0_54, %c0_55, %c0_56], %73 {strides = array<i32>} : memref<1x1x4x1xf32, #tpu.memory_space<vmem>>, vector<1x1x4x1xf32>,
      %c0_57 = arith.constant 0 : index
      %c0_58 = arith.constant 0 : index
      %74 = vector.load %arg14[%c0_57, %c0_58] : memref<4x1xf32, #tpu.memory_space<vmem>>, vector<4x1xf32>
      %c0_59 = arith.constant 0 : index
      %c0_60 = arith.constant 0 : index
      %c0_61 = arith.constant 0 : index
      %c0_62 = arith.constant 0 : index
      %75 = vector.load %arg10[%c0_59, %c0_60, %c0_61, %c0_62] : memref<1x1x4x1xf32, #tpu.memory_space<vmem>>, vector<1x1x4x1xf32>
      %76 = vector.shape_cast %75 : vector<1x1x4x1xf32> to vector<4x1xf32>
      %77 = vector.shape_cast %74 : vector<4x1xf32> to vector<1x1x4x1xf32>
      tpu.vector_store %arg10[%c0_59, %c0_60, %c0_61, %c0_62], %77 {strides = array<i32>} : memref<1x1x4x1xf32, #tpu.memory_space<vmem>>, vector<1x1x4x1xf32>,
    } else {
    }
    return
  }
  func.func @transform_0(%arg0: i32, %arg1: i32, %arg2: i32) -> (i32, i32, i32) {
    %c1_i32 = arith.constant 1 : i32
    %0 = arith.muli %arg1, %c1_i32 : i32
    %1 = arith.addi %0, %arg2 : i32
    %c0_i32 = arith.constant 0 : i32
    %c0_i32_0 = arith.constant 0 : i32
    return %arg0, %c0_i32, %1 : i32, i32, i32
  }
  func.func @transform_1(%arg0: i32, %arg1: i32, %arg2: i32) -> (i32, i32, i32) {
    %c1_i32 = arith.constant 1 : i32
    %0 = arith.muli %arg1, %c1_i32 : i32
    %1 = arith.addi %0, %arg2 : i32
    %c0_i32 = arith.constant 0 : i32
    %c0_i32_0 = arith.constant 0 : i32
    return %arg0, %c0_i32, %1 : i32, i32, i32
  }
  func.func @transform_2(%arg0: i32, %arg1: i32, %arg2: i32) -> (i32, i32, i32) {
    %c1_i32 = arith.constant 1 : i32
    %0 = arith.muli %arg1, %c1_i32 : i32
    %1 = arith.addi %0, %arg2 : i32
    %c0_i32 = arith.constant 0 : i32
    %c0_i32_0 = arith.constant 0 : i32
    return %arg0, %c0_i32, %1 : i32, i32, i32
  }
  func.func @transform_3(%arg0: i32, %arg1: i32, %arg2: i32) -> (i32, i32) {
    %c0_i32 = arith.constant 0 : i32
    %c0_i32_0 = arith.constant 0 : i32
    %c0_i32_1 = arith.constant 0 : i32
    return %c0_i32, %c0_i32_0 : i32, i32
  }
  func.func @transform_4(%arg0: i32, %arg1: i32, %arg2: i32) -> (i32, i32, i32, i32) {
    %c0_i32 = arith.constant 0 : i32
    %c0_i32_0 = arith.constant 0 : i32
    %c0_i32_1 = arith.constant 0 : i32
    return %arg0, %arg1, %c0_i32, %c0_i32_0 : i32, i32, i32, i32
  }
  func.func @transform_5(%arg0: i32, %arg1: i32, %arg2: i32) -> (i32, i32, i32, i32) {
    %c0_i32 = arith.constant 0 : i32
    %c0_i32_0 = arith.constant 0 : i32
    %c0_i32_1 = arith.constant 0 : i32
    return %arg0, %arg1, %c0_i32, %c0_i32_0 : i32, i32, i32, i32
  }
  func.func @transform_6(%arg0: i32, %arg1: i32, %arg2: i32) -> (i32, i32, i32, i32) {
    %c0_i32 = arith.constant 0 : i32
    %c0_i32_0 = arith.constant 0 : i32
    %c0_i32_1 = arith.constant 0 : i32
    return %arg0, %arg1, %c0_i32, %c0_i32_0 : i32, i32, i32, i32
  }
  func.func @transform_7(%arg0: i32, %arg1: i32, %arg2: i32) -> (i32, i32, i32, i32) {
    %c0_i32 = arith.constant 0 : i32
    %c0_i32_0 = arith.constant 0 : i32
    %c0_i32_1 = arith.constant 0 : i32
    return %arg0, %arg1, %c0_i32, %c0_i32_0 : i32, i32, i32, i32
  }
}

</mosaic_0001>

<bundles_post_ra>
// kernel: tpu_custom_call.1
= control target key start
LH: loop header
LB: loop body
LE: loop exit
PB: predicated region body
PF: predicated region fallthrough
CT: control target
= control target key end

     0   :  { %s1341_s0 = inlined_call_operand.hbm [shape: f32[2,4,256], index: 0, kind: input, shape index: {}]   ;;  %s1342_s1 = inlined_call_operand.vmem [shape: s32[2,1,256], index: 1, kind: input, shape index: {}]   ;;  %s1343_s2 = inlined_call_operand.hbm [shape: f32[2,1,256], index: 2, kind: input, shape index: {}]   ;;  %s1344_s3 = inlined_call_operand.vmem [shape: f32[4,1], index: 3, kind: input, shape index: {}]   ;;  %s1345_s4 = inlined_call_operand.vmem [shape: f32[2,1,1,1], index: 4, kind: output, shape index: {0}]   ;;  %s1346_s5 = inlined_call_operand.vmem [shape: f32[2,1,4,1], index: 5, kind: output, shape index: {1}]   ;;  %s1347_s6 = inlined_call_operand.vmem [shape: f32[2,1,4,1], index: 6, kind: output, shape index: {2}]   ;;  %s1348_s7 = inlined_call_operand.vmem [shape: f32[2,1,4,1], index: 7, kind: output, shape index: {3}]  }
   0x1   :  { %1349 = sst [smem:[#allocation12_spill]] %s1341_s0 }
   0x2   :  { %13 = vsyncpa [#allocation7], 0 }
   0x3   :  { %15 = vsyncpa [#allocation7 + $0x1], 0 }
   0x4   :  { %16 = vsyncpa [#allocation9], 0 }
   0x5   :  { %18 = vsyncpa [#allocation9 + $0x1], 0  ;;  %s1156_s24 = smov 0   ;;  %s1158_s25 = smov 0  }
   0x6   :  { %s1160_s26 = smov 0   ;;  %s1162_s27 = smov 0  }
   0x7   :  { %s1164_s28 = smov 0   ;;  %s1166_s29 = smov 0  }
   0x8 LB: > { %s906_s30 = sadd.s32 4294967295, %s1111_s29   ;;  %s43_s8 = sadd.s32 1, %s1107_s28  ;;  %s1111_s29 = sphi %s1166_s29, %s24_s29   ;;  %s1107_s28 = sphi %s1164_s28, %s1362_s28   ;;  %s1103_s27 = sphi %s1162_s27, %s1361_s27   ;;  %s1099_s26 = sphi %s1160_s26, %s1360_s26   ;;  %s1095_s25 = sphi %s1158_s25, %s1359_s25   ;;  %s1091_s24 = sphi %s1156_s24, %s1358_s24  }
   0x9   : > { %p45_p0 = scmp.ge.s32.totalorder %s43_s8, 2  ;;  %s54_s9 = sadd.s32 1, %s1099_s26 }
   0xa   : > { %p61_p1 = scmp.ne.s32.totalorder %s1099_s26, %s1095_s25  ;;  %p62_p2 = scmp.eq.s32.totalorder %s1111_s29, 0 }
   0xb   : > { %s1364_s8 = smov (%p45_p0, %s43_s8), 0  ;;  %p67_p4 = scmp.ne.s32.totalorder %s1095_s25, %s1091_s24 }
   0xc   : > { %p1192_p3 = por %p62_p2, %p61_p1  ;;  %s49_s11 = ssub.s32 %s1107_s28, %s1364_s8 }
   0xd   : > { %p68_p5 = scmp.eq.s32.totalorder %s906_s30, 0  ;;  %p52_p6 = scmp.eq.s32.totalorder %s49_s11, 0 }
   0xe   : > { %p938_p8 = scmp.lt.s32.totalorder %s1111_s29, 2  ;;  %s287_s14 = sand.u32 1, %s1099_s26  }
   0xf   : > { %p1199_p7 = por %p68_p5, %p67_p4  ;;  %s926_s15 = sshll.u32 %s1107_s28, 3 }
  0x10   : > { %s1205_s13 = scalar_select %p52_p6, %s1099_s26, %s54_s9  }
  0x11   : > { %s910_s16 = sshll.u32 %s287_s14, 3  ;;  %s1352_s0 = sld [smem:[#allocation12_spill]] }
  0x12   : > { %s291_s21 = scalar_lea.vmem [#allocation6], %s910_s16  ;;  %p1214_p9 = pnand %p938_p8, %p1192_p3 }
  0x13   : > { %s303_s22 = sshll.u32 %s291_s21, 4  ;;  %p915_p10 = scmp.ge.s32.totalorder %s1111_s29, 1  ;;  %s304_s22 = int_to_ptr.vmem [resolvable:$true] %s303_s22 }
  0x14   : > { %p344_p11 = scmp.lt.s32.totalorder %s1111_s29, 3  ;;  %s913_s24 = sshll.u32 %s287_s14, 1 }
  0x15   : > { %s288_s30 = scalar_lea.sflag [#allocation7], %s287_s14  ;;  %s914_s9 = sshll.u32 %s1107_s28, 1 }
  0x16   : > { %p345_p12 = pnand %p915_p10, %p344_p11  ;;  %s328_s11 = scalar_lea.vmem [#allocation8], %s913_s24 }
  0x17   : > { %s299_s19 = scalar_lea.hbm %s1352_s0, %s926_s15  ;;  %s339_s15 = sshll.u32 %s328_s11, 4  ;;  %s340_s15 = int_to_ptr.vmem [resolvable:$true] %s339_s15 }
  0x18   : > { %s301_s20 = sshll.u32 %s299_s19, 4  ;;  %s335_s10 = scalar_lea.hbm %s1343_s2, %s914_s9  ;;  %s302_s20 = int_to_ptr.hbm [resolvable:$true] %s301_s20 }
  0x19   : > { %934 = dma.hbm_to_vmem [thread:$0]  (!%p1214_p9), %s302_s20, 128, %s304_s22, %s288_s30  }
  0x1a   : > { %s337_s18 = sshll.u32 %s335_s10, 4  ;;  %s325_s19 = scalar_lea.sflag [#allocation9], %s287_s14  ;;  %s338_s18 = int_to_ptr.hbm [resolvable:$true] %s337_s18 }
  0x1b   : > { %937 = dma.hbm_to_vmem [thread:$0]  (!%p1214_p9), %s338_s18, 32, %s340_s15, %s325_s19  }
  0x1c   : > { %348 = sbr.rel (%p345_p12) target bundleno = 315 (0x13b), region = 36  ;;  %s350_s21 = sand.u32 (!%p345_p12), 1, %s1095_s25  }
  0x1d   : > { %s916_s0 = sshll.u32 (!%p345_p12), %s350_s21, 3  ;;  %s351_s20 = scalar_lea.sflag (!%p345_p12), [#allocation7], %s350_s21 }
  0x1e   : > { %s354_s22 = scalar_lea.vmem (!%p345_p12), [#allocation6], %s916_s0 }
  0x21   : > { %1082 = dma.done.wait (%p1199_p7), %s351_s20, 128  }
  0x22   : > { %1084 = vsyncadd (%p1199_p7), %s351_s20, 4294967168  ;;  %s917_s24 = sshll.u32 %s350_s21, 1  ;;  %s361_s30 = scalar_lea.sflag [#allocation9], %s350_s21 }
  0x23   : > { %s1233_s9 = scalar_lea.vmem [#allocation8], %s917_s24 }
  0x24   : > { %1086 = dma.done.wait (%p1199_p7), %s361_s30, 32  }
  0x25   : > { %1088 = vsyncadd (%p1199_p7), %s361_s30, 4294967264  ;;  %v1113_v0 = vmov 0   ;;  %v486_v1 = vld [vmem:[%s1344_s3] sm:$0xf]  ;;  %vm499_vm0 = vcmask 1043456   ;;  %p436_p13 = scmp.lt.s32.totalorder %s1103_s27, 1  ;;  %v487_v41 = vlaneseq }
  0x26   : > { %990 = vset.pattern.permute.xlu0 %v1113_v0  ;;  %v1242_v2 = vld [vmem:[%s354_s22] sm:$0xff]  ;;  %v1114_v50 = vmov 839922192   ;;  %v1115_v54 = vmov 0.0   ;;  %vm480_vm3 = vcmask 3072   ;;  %vm608_vm4 = vcmask 1040384  }
  0x27   : > { %554 = vperm.xlu0 %990, %v486_v1   ;;  %494 = vst [vmem:[#allocation1] ss:$2 sm:$0xff] %v1242_v2  ;;  %s1366_s27 = smov (!%p436_p13, %s1103_s27), 1  ;;  %v488_v45 = vshrl.u32 %v487_v41, 7  ;;  %v557_v51 = vunpack.c.l.s4 %v1114_v50  ;;  %vm478_vm5 = vcmask 0  }
  0x28   : > { %s918_s0 = sshll.u32 %s1366_s27, 1  ;;  %481 = vst.msk [vmem:[#allocation3] sm:$0xf] %vm480_vm3, %v1115_v54  ;;  %s919_s16 = sshll.u32 %s1366_s27, 2 }
  0x29   : > { %s442_s15 = scalar_lea.vmem %s1342_s1, %s918_s0  ;;  %v558_v61 = vunpack.c.0.s8 %v557_v51  ;;  %482 = vst.msk [vmem:[#allocation4] sm:$0xf] %vm480_vm3, %v1115_v54  ;;  %s473_s18 = scalar_lea.vmem %s1348_s7, %s919_s16 }
  0x2a   : > { %v485_v42 = vld [vmem:[%s442_s15] sm:$0x3]  ;;  %483 = vst.msk [vmem:[#allocation5] sm:$0xf] %vm480_vm3, %v1115_v54  ;;  %s459_s20 = scalar_lea.vmem %s1346_s5, %s919_s16  ;;  %s466_s30 = scalar_lea.vmem %s1347_s6, %s919_s16 }
  0x2b   : > { %v489_v46 = vperm.slane %v485_v42, 0  ;;  %v490_v47 = vperm.slane %v485_v42, 1  ;;  %479 = vst.msk [vmem:[#allocation2] sm:$0x1] %vm478_vm5, %v1115_v54  ;;  %s452_s23 = scalar_lea.vmem %s1345_s4, %s1366_s27 }
  0x2d   : > { %vm1259_vm1 = vcmp.eq.s32.totalorder %v488_v45, %v489_v46  ;;  %vm1263_vm2 = vcmp.eq.s32.totalorder %v488_v45, %v490_v47 }
  0x2e   : > { %v496_v3 = vld.sshfl [vmem:[#allocation1 + $0x8] sm:$0xff pattern:$0x75316420]  ;;  %v495_v5 = vld.sshfl [vmem:[#allocation1] sm:$0xff pattern:$0x75316420] }
  0x2f   : > { %v507_v4 = vsel %vm499_vm0, %v496_v3, -inf  ;;  %v500_v7 = vsel %vm499_vm0, %v495_v5, -inf  ;;  %v922_v55 = vsel %vm1259_vm1, 1.0, %v1115_v54  ;;  %v923_v56 = vsel %vm1263_vm2, 1.0, %v1115_v54 }
  0x30   : > { %v508_v6 = vrot.slane %v507_v4, 4  ;;  %v501_v8 = vrot.slane %v500_v7, 4  ;;  %v640_v57 = vsel %vm499_vm0, %v922_v55, 0.0  ;;  %v641_v58 = vsel %vm499_vm0, %v923_v56, 0.0  ;;  %v626_v51 = vld [vmem:[#allocation4] sm:$0xf] }
  0x31   : > { %v642_v60 = vadd.f32 %v641_v58, %v640_v57  ;;  %v639_v45 = vld [vmem:[#allocation5] sm:$0xf] }
  0x32   : > { %v509_v9 = vmax.f32 %v507_v4, %v508_v6  ;;  %v502_v10 = vmax.f32 %v500_v7, %v501_v8  ;;  %v586_v7 = vld [vmem:[%s1233_s9] sm:$0x3] }
  0x33   : > { %643 = vadd.xlane.f32.xlu2 %v642_v60  ;;  %v607_v52 = vld [vmem:[#allocation2] sm:$0x1] }
  0x34   : > { %v510_v11 = vrot.slane %v509_v9, 2  ;;  %v503_v12 = vrot.slane %v502_v10, 2 }
  0x36   : > { %v511_v13 = vmax.f32 %v509_v9, %v510_v11  ;;  %v504_v14 = vmax.f32 %v502_v10, %v503_v12  ;;  %v587_v12 = vadd.f32 1.0, %v586_v7 }
  0x38   : > { %v512_v15 = vrot.slane %v511_v13, 1  ;;  %v505_v16 = vrot.slane %v504_v14, 1 }
  0x3a   : > { %v513_v17 = vmax.f32 %v511_v13, %v512_v15  ;;  %v506_v18 = vmax.f32 %v504_v14, %v505_v16 }
  0x3c   : > { %v516_v19 = vrot.slane %v513_v17, 4 }
  0x3e   : > { %v517_v20 = vsel %vm499_vm0, %v506_v18, %v516_v19  ;;  %v588_v19 = vmul.f32 %v587_v12, %v587_v12 }
  0x3f   : > { %v519_v21 = vsub.f32 %v1242_v2, %v517_v20 }
  0x41   : > { %v520_v22 = vmul.f32 1.442695, %v519_v21 }
  0x43   : > { %991 = vpow2.f32 %v520_v22 }
  0x49   : > { %v992_v23 = vpop.eup %991 }
  0x4a   : > { %523 = vst [vmem:[#allocation1] ss:$2 sm:$0xff] %v992_v23 }
  0x51   : > { %v525_v24 = vld.sshfl [vmem:[#allocation1 + $0x8] sm:$0xff pattern:$0x75316420]  ;;  %v524_v26 = vld.sshfl [vmem:[#allocation1] sm:$0xff pattern:$0x75316420] }
  0x52   : > { %v535_v25 = vsel %vm499_vm0, %v525_v24, 0.0  ;;  %v528_v28 = vsel %vm499_vm0, %v524_v26, 0.0 }
  0x53   : > { %v536_v27 = vrot.slane %v535_v25, 4  ;;  %v529_v29 = vrot.slane %v528_v28, 4 }
  0x55   : > { %v537_v30 = vadd.f32 %v536_v27, %v535_v25  ;;  %v530_v31 = vadd.f32 %v529_v29, %v528_v28 }
  0x57   : > { %v538_v32 = vrot.slane %v537_v30, 2  ;;  %v531_v33 = vrot.slane %v530_v31, 2 }
  0x59   : > { %v539_v34 = vadd.f32 %v538_v32, %v537_v30  ;;  %v532_v35 = vadd.f32 %v531_v33, %v530_v31  ;;  %v590_v31 = vperm.slane %v588_v19, 0  ;;  %v591_v32 = vperm.slane %v588_v19, 1 }
  0x5b   : > { %v540_v36 = vrot.slane %v539_v34, 1  ;;  %v533_v37 = vrot.slane %v532_v35, 1 }
  0x5d   : > { %v541_v38 = vadd.f32 %v540_v36, %v539_v34  ;;  %v534_v39 = vadd.f32 %v533_v37, %v532_v35 }
  0x5f   : > { %993 = vlog2.f32 %v541_v38 }
  0x60   : > { %995 = vlog2.f32 %v534_v39 }
  0x65   : > { %v994_v40 = vpop.eup %993 }
  0x66   : > { %v545_v43 = vmul.f32 0.6931472, %v994_v40  ;;  %v996_v44 = vpop.eup %995 }
  0x67   : > { %v543_v48 = vmul.f32 0.6931472, %v996_v44 }
  0x68   : > { %v548_v49 = vrot.slane %v545_v43, 4 }
  0x6a   : > { %v549_v59 = vsel %vm499_vm0, %v543_v48, %v548_v49  ;;  %v617_v48 = vld [vmem:[#allocation3] sm:$0xf] }
  0x6b   : > { %v551_v62 = vsub.f32 %v519_v21, %v549_v59 }
  0x99   : > { %v555_v63 = vpop.permute.xlu0 %554 }
  0x9a   : > { %v559_v0 = vperm.slane %v555_v63, %v558_v61 }
  0x9c   : > { %v561_v1 = vmul.f32 %v559_v0, %v551_v62 }
  0x9e   : > { %563 = vst [vmem:[#allocation1] ss:$2 sm:$0xff] %v561_v1 }
  0xa5   : > { %v564_v3 = vld.sshfl [vmem:[#allocation1] sm:$0xff pattern:$0x75316420]  ;;  %v565_v4 = vld.sshfl [vmem:[#allocation1 + $0x8] sm:$0xff pattern:$0x75316420] }
  0xa6   : > { %v569_v5 = vsel %vm1263_vm2, %v565_v4, 0.0  ;;  %596 = vst [vmem:[#allocation1] ss:$2 sm:$0xff] %v1242_v2  ;;  %v568_v6 = vsel %vm1259_vm1, %v564_v3, 0.0  ;;  %v644_v44 = vpop.xlane.xlu2 %643 }
  0xa7   : > { %v577_v8 = vsel %vm499_vm0, %v569_v5, 0.0  ;;  %v570_v9 = vsel %vm499_vm0, %v568_v6, 0.0  ;;  %v645_v46 = vadd.f32 %v644_v44, %v639_v45 }
  0xa8   : > { %v578_v10 = vrot.slane %v577_v8, 4  ;;  %v571_v11 = vrot.slane %v570_v9, 4 }
  0xa9   : > { %646 = vst.msk [vmem:[#allocation5] sm:$0xf] %vm480_vm3, %v645_v46 }
  0xaa   : > { %v579_v13 = vadd.f32 %v578_v10, %v577_v8  ;;  %v572_v14 = vadd.f32 %v571_v11, %v570_v9 }
  0xac   : > { %v580_v15 = vrot.slane %v579_v13, 2  ;;  %v573_v16 = vrot.slane %v572_v14, 2 }
  0xad   : > { %v597_v17 = vld.sshfl [vmem:[#allocation1] sm:$0xff pattern:$0x75316420]  ;;  %v598_v18 = vld.sshfl [vmem:[#allocation1 + $0x8] sm:$0xff pattern:$0x75316420] }
  0xae   : > { %v601_v20 = vsel %vm1259_vm1, %v597_v17, 0.0  ;;  %v602_v21 = vsel %vm1263_vm2, %v598_v18, 0.0  ;;  %627 = vst [vmem:[#allocation1] ss:$2 sm:$0xff] %v1242_v2  ;;  %v574_v22 = vadd.f32 %v573_v16, %v572_v14  ;;  %v581_v23 = vadd.f32 %v580_v15, %v579_v13 }
  0xaf   : > { %v618_v24 = vsel %vm499_vm0, %v601_v20, 0.0  ;;  %v619_v25 = vsel %vm499_vm0, %v602_v21, 0.0 }
  0xb0   : > { %v620_v26 = vadd.f32 %v619_v25, %v618_v24  ;;  %v575_v27 = vrot.slane %v574_v22, 1  ;;  %v582_v28 = vrot.slane %v581_v23, 1  ;;  %v656_v47 = vld [vmem:[#allocation5] sm:$0xf] }
  0xb1   : > { %657 = vst.msk [vmem:[%s473_s18] sm:$0xf] %vm480_vm3, %v656_v47 }
  0xb2   : > { %621 = vadd.xlane.f32.xlu1 %v620_v26  ;;  %v576_v29 = vadd.f32 %v575_v27, %v574_v22  ;;  %v583_v30 = vadd.f32 %v582_v28, %v581_v23 }
  0xb4   : > { %v584_v33 = vsub.f32 0.0, %v576_v29  ;;  %v585_v34 = vsub.f32 0.0, %v583_v30 }
  0xb5   : > { %v628_v35 = vld.sshfl [vmem:[#allocation1] sm:$0xff pattern:$0x75316420]  ;;  %v629_v36 = vld.sshfl [vmem:[#allocation1 + $0x8] sm:$0xff pattern:$0x75316420] }
  0xb6   : > { %v632_v2 = vsel %vm499_vm0, %v628_v35, 0.0  ;;  %v633_v37 = vsel %vm499_vm0, %v629_v36, 0.0  ;;  %v594_v38 = vmul.f32 %v590_v31, %v584_v33  ;;  %v595_v39 = vmul.f32 %v591_v32, %v585_v34 }
  0xb7   : > { %v634_v40 = vadd.f32 %v633_v37, %v632_v2 }
  0xb8   : > { %v609_v41 = vsel %vm608_vm4, %v594_v38, 0.0  ;;  %v610_v42 = vsel %vm608_vm4, %v595_v39, 0.0 }
  0xb9   : > { %v611_v43 = vadd.f32 %v610_v42, %v609_v41 }
  0xba   : > { %635 = vadd.xlane.f32.xlu1 %v634_v40 }
  0xbb   : > { %612 = vadd.xlane.f32.xlu0 %v611_v43 }
 0x125   : > { %v622_v49 = vpop.xlane.xlu1 %621 }
 0x126   : > { %v623_v50 = vadd.f32 %v622_v49, %v617_v48 }
 0x128   : > { %625 = vst.msk [vmem:[#allocation3] sm:$0xf] %vm480_vm3, %v623_v50 }
 0x12d   : > { %v636_v53 = vpop.xlane.xlu1 %635 }
 0x12e   : > { %v637_v54 = vadd.f32 %v636_v53, %v626_v51  ;;  %v613_v55 = vpop.xlane.xlu0 %612 }
 0x12f   : > { %v652_v56 = vld [vmem:[#allocation3] sm:$0xf]  ;;  %v614_v57 = vadd.f32 %v613_v55, %v607_v52 }
 0x130   : > { %653 = vst.msk [vmem:[%s459_s20] sm:$0xf] %vm480_vm3, %v652_v56 }
 0x131   : > { %638 = vst.msk [vmem:[#allocation4] sm:$0xf] %vm480_vm3, %v637_v54 }
 0x132   : > { %616 = vst.msk [vmem:[#allocation2] sm:$0x1] %vm478_vm5, %v614_v57 }
 0x138   : > { %v654_v58 = vld [vmem:[#allocation4] sm:$0xf] }
 0x139   : > { %655 = vst.msk [vmem:[%s466_s30] sm:$0xf] %vm480_vm3, %v654_v58  ;;  %v650_v59 = vld [vmem:[#allocation2] sm:$0x1] }
 0x13a   : > { %651 = vst.msk [vmem:[%s452_s23] sm:$0x1] %vm478_vm5, %v650_v59 }
 0x13b PF: > { %s24_s29 = sadd.s32 1, %s1111_s29   ;;  %s1358_s24 = smov %s1095_s25 }
 0x13c   : > { %p21_p0 = scmp.ge.s32.totalorder %s24_s29, 4   ;;  %s1359_s25 = smov %s1099_s26 }
 0x13d   : > { %s1360_s26 = smov %s1205_s13  ;;  %s1361_s27 = smov %s1107_s28 }
 0x13e   : > { %s1362_s28 = smov %s1364_s8  ;;  %23 = sbr.rel (!%p21_p0) target bundleno = 8 (0x8), region = 136 }
 0x143   :  { %741 = vsyncpa [#allocation7], 1 }
 0x144   :  { %743 = vsyncpa [#allocation7 + $0x1], 1 }
 0x145   :  { %744 = vsyncpa [#allocation9], 1 }
 0x146   :  { %746 = vsyncpa [#allocation9 + $0x1], 1 }

</bundles_post_ra>
